<compile_context>
chip_gen: v5e
topology: v5e:2x2
jax: 0.10.0
libtpu: 0.0.40
codegen_flags: <defaults>
</compile_context>

<pallas_src>
import functools

import jax
import jax.numpy as jnp
from jax import lax
from jax.experimental import pallas as pl
from jax.experimental.pallas import tpu as pltpu

OUT_LANES = 128  # lane-dense output slab width (column 0 holds the result)


def _round_up(n, m):
    return ((n + m - 1) // m) * m


def _pad_to(a, shape, dtype):
    pads = [(0, t - s) for s, t in zip(a.shape, shape)]
    return jnp.pad(a, pads).astype(dtype)


def _act_fn(activation):
    if activation == "relu":
        return lambda v: jnp.maximum(v, 0.0)
    return jnp.tanh


def _vmem_capacity_bytes():
    try:
        info = pltpu.get_tpu_info()
        cap = getattr(info, "vmem_capacity_bytes", None)
        if cap:
            return int(cap)
    except Exception:
        pass
    return 64 << 20  # conservative (v7x-sized) fallback


def _const_spec(shape, index_map):
    """Grid-invariant block: single VMEM buffer (double-buffering buys nothing)."""
    try:
        return pl.BlockSpec(shape, index_map, pipeline_mode=pl.Buffered(1))
    except TypeError:  # older jax without pipeline_mode on BlockSpec
        return pl.BlockSpec(shape, index_map)


# ---------------------------------------------------------------------------
# Kernel A: all weights VMEM-resident.  grid = (batch tiles,)
# ---------------------------------------------------------------------------
def _resident_kernel(x_ref, w1_ref, b1_ref, wh_ref, bh_ref, wo_ref, bo_ref,
                     o_ref, *, n_hidden_extra, activation, unroll_layers):
    """x:(TB,F)  w1:(F,H)  b1:(1,H)  wh:(Lh,H,H)  bh:(Lh,1,H)
    wo:(H,128)  bo:(1,128)  o:(TB,128)   (H = padded hidden width)."""
    act = _act_fn(activation)
    cdt = w1_ref.dtype  # MXU input dtype; accumulation is always f32

    h = jnp.dot(x_ref[...].astype(cdt), w1_ref[...],
                preferred_element_type=jnp.float32)
    h = act(h + b1_ref[...])

    if n_hidden_extra > 0:
        def layer(i, h):
            hh = jnp.dot(h.astype(cdt), wh_ref[i],
                         preferred_element_type=jnp.float32)
            return act(hh + bh_ref[i])

        if n_hidden_extra <= unroll_layers:
            for i in range(n_hidden_extra):      # small static unroll
                h = layer(i, h)
        else:                                    # deep nets: bounded live ranges
            h = lax.fori_loop(0, n_hidden_extra, layer, h, unroll=2)

    out = jnp.dot(h.astype(cdt), wo_ref[...],
                  preferred_element_type=jnp.float32) + bo_ref[...]
    o_ref[...] = jax.nn.sigmoid(out).astype(o_ref.dtype)


# ---------------------------------------------------------------------------
# Kernel B: hidden-layer weights streamed over grid axis 1 (one layer per
# step), activations carried in a VMEM scratch.  grid = (batch tiles, Lh)
# ---------------------------------------------------------------------------
def _stream_kernel(x_ref, w1_ref, b1_ref, wh_ref, bh_ref, wo_ref, bo_ref,
                   o_ref, h_ref, *, activation):
    act = _act_fn(activation)
    cdt = w1_ref.dtype
    l = pl.program_id(1)

    @pl.when(l == 0)
    def _():
        h0 = jnp.dot(x_ref[...].astype(cdt), w1_ref[...],
                     preferred_element_type=jnp.float32)
        h_ref[...] = act(h0 + b1_ref[...])

    hh = jnp.dot(h_ref[...].astype(cdt), wh_ref[0],
                 preferred_element_type=jnp.float32)
    h_ref[...] = act(hh + bh_ref[0])

    @pl.when(l == pl.num_programs(1) - 1)
    def _():
        out = jnp.dot(h_ref[...].astype(cdt), wo_ref[...],
                      preferred_element_type=jnp.float32) + bo_ref[...]
        o_ref[...] = jax.nn.sigmoid(out).astype(o_ref.dtype)


# ---------------------------------------------------------------------------
# Wrapper
# ---------------------------------------------------------------------------
def mlp_forward(x, params, *, activation="relu", compute_dtype=jnp.bfloat16,
                batch_tile=512, unroll_layers=4, pad_hidden_to=128,
                stream_layers=None, out_dtype=None):
    """params = (w1, b1, wh, bh, wo, bo); weights pre-transposed to (in, out).
    Returns float32 (B, 1) = sigmoid(MLP(x))."""
    w1, b1, wh, bh, wo, bo = params
    B, F = x.shape
    H = w1.shape[1]
    Lh = wh.shape[0]  # number of extra hidden layers (no_of_layers - 1)

    cdt = jnp.dtype(compute_dtype)
    if out_dtype is None:
        odt = jnp.dtype(jnp.float32) if cdt.name == "float32" else jnp.dtype(jnp.bfloat16)
    else:
        odt = jnp.dtype(out_dtype)

    # Pad hidden width to a lane-dense multiple of 128 (exactly value
    # preserving; on v6e/v7x a multiple of 256 is ideal, 128 is the minimum).
    Hp = _round_up(H, pad_hidden_to) if pad_hidden_to else H

    w1c = _pad_to(w1, (F, Hp), cdt)
    b1c = _pad_to(b1, (1, Hp), jnp.float32)

    if Lh == 0:
        whc = jnp.zeros((1, Hp, Hp), cdt)        # dummy buffer, never read
        bhc = jnp.zeros((1, 1, Hp), jnp.float32)
    else:
        whc = _pad_to(wh, (Lh, Hp, Hp), cdt)
        bhc = _pad_to(bh, (Lh, 1, Hp), jnp.float32)
    Lh_buf = whc.shape[0]

    # Lane-dense output projection: (H,1) -> (Hp, OUT_LANES), zero elsewhere.
    wo_pad = jnp.zeros((Hp, OUT_LANES), cdt).at[:H, 0:1].set(wo.astype(cdt))
    bo_pad = jnp.zeros((1, OUT_LANES), jnp.float32).at[:, 0:1].set(
        bo.astype(jnp.float32))

    # ---- batch tiling ------------------------------------------------------
    if B > batch_tile:
        TB = batch_tile
    elif B >= 512:
        TB = _round_up(pl.cdiv(B, 2), 8)   # >= 2 grid steps -> both v7x TCs
    else:
        TB = B                             # small batch: single full tile
    n_btiles = pl.cdiv(B, TB)

    # ---- VMEM budget & resident-vs-streaming decision ------------------------
    cap = int(0.8 * _vmem_capacity_bytes())          # ~102 MiB v5e/v6e, ~51 MiB v7x
    tile_bytes = 2 * TB * F * 4 + 2 * TB * OUT_LANES * odt.itemsize
    act_bytes = 4 * TB * Hp * 4
    small_w = (F * Hp + Hp * OUT_LANES) * cdt.itemsize
    small_b = (Hp + OUT_LANES) * 4
    stack_w = Lh_buf * (Hp * Hp * cdt.itemsize + Hp * 4)

    resident_est = small_w + small_b + stack_w + tile_bytes + act_bytes
    stream_est = (small_w + small_b + 2 * (Hp * Hp * cdt.itemsize + Hp * 4)
                  + tile_bytes + act_bytes + TB * Hp * 4)

    if stream_layers is None:
        stream = (Lh > 0) and (resident_est > cap)
    else:
        stream = bool(stream_layers) and (Lh > 0)

    est = stream_est if stream else resident_est
    vmem_limit = int(min(max(est + (4 << 20), 16 << 20), cap))

    # Advisory cost estimate (helps XLA schedule the wrapper-side pad/casts).
    flops = 2 * B * (F * Hp + Lh * Hp * Hp + Hp * OUT_LANES)
    transcendentals = B * OUT_LANES + (B * Hp * (Lh + 1) if activation == "tanh" else 0)
    bytes_accessed = (B * F * 4 + B * OUT_LANES * odt.itemsize
                      + (F * Hp + Lh_buf * Hp * Hp + Hp * OUT_LANES) * cdt.itemsize
                      + (Hp + Lh_buf * Hp + OUT_LANES) * 4)
    cost = pl.CostEstimate(flops=int(flops), transcendentals=int(transcendentals),
                           bytes_accessed=int(bytes_accessed))

    if not stream:
        kernel = functools.partial(
            _resident_kernel, n_hidden_extra=Lh, activation=activation,
            unroll_layers=unroll_layers)
        out_slab = pl.pallas_call(
            kernel,
            out_shape=jax.ShapeDtypeStruct((B, OUT_LANES), odt),
            grid=(n_btiles,),
            in_specs=[
                pl.BlockSpec((TB, F), lambda i: (i, 0)),                  # x: tiled
                _const_spec((F, Hp), lambda i: (0, 0)),                   # resident
                _const_spec((1, Hp), lambda i: (0, 0)),
                _const_spec((Lh_buf, Hp, Hp), lambda i: (0, 0, 0)),
                _const_spec((Lh_buf, 1, Hp), lambda i: (0, 0, 0)),
                _const_spec((Hp, OUT_LANES), lambda i: (0, 0)),
                _const_spec((1, OUT_LANES), lambda i: (0, 0)),
            ],
            out_specs=pl.BlockSpec((TB, OUT_LANES), lambda i: (i, 0)),
            compiler_params=pltpu.CompilerParams(
                dimension_semantics=("parallel",),
                vmem_limit_bytes=vmem_limit),
            cost_estimate=cost,
        )(x, w1c, b1c, whc, bhc, wo_pad, bo_pad)
    else:
        kernel = functools.partial(_stream_kernel, activation=activation)
        out_slab = pl.pallas_call(
            kernel,
            out_shape=jax.ShapeDtypeStruct((B, OUT_LANES), odt),
            grid=(n_btiles, Lh),
            in_specs=[
                pl.BlockSpec((TB, F), lambda i, l: (i, 0)),               # x: per-i
                _const_spec((F, Hp), lambda i, l: (0, 0)),                # resident
                _const_spec((1, Hp), lambda i, l: (0, 0)),
                pl.BlockSpec((1, Hp, Hp), lambda i, l: (l, 0, 0)),        # streamed
                pl.BlockSpec((1, 1, Hp), lambda i, l: (l, 0, 0)),         # streamed
                _const_spec((Hp, OUT_LANES), lambda i, l: (0, 0)),
                _const_spec((1, OUT_LANES), lambda i, l: (0, 0)),
            ],
            out_specs=pl.BlockSpec((TB, OUT_LANES), lambda i, l: (i, 0)),
            scratch_shapes=[pltpu.VMEM((TB, Hp), jnp.float32)],
            compiler_params=pltpu.CompilerParams(
                dimension_semantics=("parallel", "arbitrary"),
                vmem_limit_bytes=vmem_limit),
            cost_estimate=cost,
        )(x, w1c, b1c, whc, bhc, wo_pad, bo_pad)

    return out_slab[:, :1].astype(jnp.float32)


# ---------------------------------------------------------------------------
# Parameter init mirroring the PyTorch module, and a pure-JAX reference.
# ---------------------------------------------------------------------------
def init_params(key, input_size, no_of_layers, hidden_size, activation="relu"):
    """relu -> kaiming_uniform; tanh -> xavier_uniform; biases use PyTorch's
    default Linear bias init U(-1/sqrt(fan_in), 1/sqrt(fan_in)).  Weights are
    stored pre-transposed to (in, out)."""
    keys = jax.random.split(key, 2 * (no_of_layers + 1))

    def w_init(k, fan_in, fan_out):
        if activation == "relu":
            bound = jnp.sqrt(6.0 / fan_in)
        else:
            bound = jnp.sqrt(6.0 / (fan_in + fan_out))
        return jax.random.uniform(k, (fan_in, fan_out), jnp.float32, -bound, bound)

    def b_init(k, fan_in, fan_out):
        bound = 1.0 / jnp.sqrt(fan_in)
        return jax.random.uniform(k, (1, fan_out), jnp.float32, -bound, bound)

    w1 = w_init(keys[0], input_size, hidden_size)
    b1 = b_init(keys[1], input_size, hidden_size)

    wh_list, bh_list = [], []
    for i in range(1, no_of_layers):
        wh_list.append(w_init(keys[2 * i], hidden_size, hidden_size))
        bh_list.append(
            b_init(keys[2 * i + 1], hidden_size, hidden_size).reshape(1, 1, hidden_size))
    if wh_list:
        wh = jnp.stack(wh_list, axis=0)                 # (L-1, H, H)
        bh = jnp.concatenate(bh_list, axis=0)           # (L-1, 1, H)
    else:
        wh = jnp.zeros((0, hidden_size, hidden_size), jnp.float32)
        bh = jnp.zeros((0, 1, hidden_size), jnp.float32)

    wo = w_init(keys[-2], hidden_size, 1)               # (H, 1)
    bo = b_init(keys[-1], hidden_size, 1)               # (1, 1)
    return (w1, b1, wh, bh, wo, bo)


def mlp_reference(x, params, *, activation="relu"):
    w1, b1, wh, bh, wo, bo = params
    act = _act_fn(activation)
    h = act(x @ w1 + b1)
    for i in range(wh.shape[0]):
        h = act(h @ wh[i] + bh[i])
    return jax.nn.sigmoid(h @ wo + bo)


if __name__ == "__main__":
    key = jax.random.PRNGKey(0)
    k_x, k_p = jax.random.split(key)

    batch = 8
    input_size = 32
    hidden_size = 32
    no_of_layers = 3
    activation = "relu"

    x = jax.random.normal(k_x, (batch, input_size), jnp.float32)
    params = init_params(k_p, input_size, no_of_layers, hidden_size, activation)
    ref = mlp_reference(x, params, activation=activation)

    # Explicit f32 compute path (tight tolerance).
    out_f32 = jax.block_until_ready(
        mlp_forward(x, params, activation=activation, compute_dtype=jnp.float32))
    assert out_f32.shape == (batch, 1)
    assert jnp.allclose(out_f32, ref, atol=1e-5, rtol=1e-5), "f32 mismatch vs reference"

    # Default path: bf16 MXU inputs, f32 accumulation/activations, bf16 writeback.
    out_bf16 = jax.block_until_ready(mlp_forward(x, params, activation=activation))
    assert out_bf16.shape == (batch, 1)
    assert jnp.allclose(out_bf16, ref, atol=3e-2, rtol=3e-2), "bf16 mismatch vs reference"

    # no_of_layers == 1 path (no extra hidden layers).
    p1 = init_params(jax.random.PRNGKey(1), input_size, 1, hidden_size, activation)
    out1 = jax.block_until_ready(
        mlp_forward(x, p1, activation=activation, compute_dtype=jnp.float32))
    assert jnp.allclose(out1, mlp_reference(x, p1, activation=activation),
                        atol=1e-5, rtol=1e-5), "L=1 mismatch vs reference"

    # Deep tanh path exercising the in-kernel fori_loop (resident weights).
    p6 = init_params(jax.random.PRNGKey(2), input_size, 6, hidden_size, "tanh")
    ref6 = mlp_reference(x, p6, activation="tanh")
    out6 = jax.block_until_ready(
        mlp_forward(x, p6, activation="tanh", compute_dtype=jnp.float32))
    assert jnp.allclose(out6, ref6, atol=1e-5, rtol=1e-5), "deep/tanh mismatch"

    # Forced layer-streaming path (grid axis over layers + VMEM scratch carry).
    out6s = jax.block_until_ready(
        mlp_forward(x, p6, activation="tanh", compute_dtype=jnp.float32,
                    stream_layers=True))
    assert jnp.allclose(out6s, ref6, atol=1e-5, rtol=1e-5), "streamed mismatch"

    print("KERNEL_OK")
</pallas_src>

<mosaic_0001>
module attributes {stable_mosaic.version = 11 : i64} {
  func.func @_resident_kernel(%arg0: i32, %arg1: memref<8x32xf32, #tpu.memory_space<vmem>>, %arg2: memref<32x128xf32, #tpu.memory_space<vmem>>, %arg3: memref<1x128xf32, #tpu.memory_space<vmem>>, %arg4: memref<2x128x128xf32, #tpu.memory_space<vmem>>, %arg5: memref<2x1x128xf32, #tpu.memory_space<vmem>>, %arg6: memref<128x128xf32, #tpu.memory_space<vmem>>, %arg7: memref<1x128xf32, #tpu.memory_space<vmem>>, %arg8: memref<8x128xf32, #tpu.memory_space<vmem>>) attributes {dimension_semantics = [#tpu.dimension_semantics<parallel>], iteration_bounds = array<i64: 1>, scalar_prefetch = 0 : i64, scratch_operands = 0 : i64, tpu.core_type = #tpu.core_type<tc>, window_params = [{transform_indices = @transform_0, window_bounds = array<i64: 8, 32>}, {pipeline_mode = #tpu.pipeline_mode<synchronous>, transform_indices = @transform_1, window_bounds = array<i64: 32, 128>}, {pipeline_mode = #tpu.pipeline_mode<synchronous>, transform_indices = @transform_2, window_bounds = array<i64: 1, 128>}, {pipeline_mode = #tpu.pipeline_mode<synchronous>, transform_indices = @transform_3, window_bounds = array<i64: 2, 128, 128>}, {pipeline_mode = #tpu.pipeline_mode<synchronous>, transform_indices = @transform_4, window_bounds = array<i64: 2, 1, 128>}, {pipeline_mode = #tpu.pipeline_mode<synchronous>, transform_indices = @transform_5, window_bounds = array<i64: 128, 128>}, {pipeline_mode = #tpu.pipeline_mode<synchronous>, transform_indices = @transform_6, window_bounds = array<i64: 1, 128>}, {transform_indices = @transform_7, window_bounds = array<i64: 8, 128>}]} {
    %c0 = arith.constant 0 : index
    %c0_0 = arith.constant 0 : index
    %0 = vector.load %arg1[%c0, %c0_0] : memref<8x32xf32, #tpu.memory_space<vmem>>, vector<8x32xf32>
    %c0_1 = arith.constant 0 : index
    %c0_2 = arith.constant 0 : index
    %1 = vector.load %arg2[%c0_1, %c0_2] : memref<32x128xf32, #tpu.memory_space<vmem>>, vector<32x128xf32>
    %cst = arith.constant dense<0.000000e+00> : vector<8x128xf32>
    %2 = tpu.matmul %0, %1, %cst {dimension_numbers = #tpu.dot_dimension_numbers<[1], [0], [0], [1], [0, 0, 1, 1], [], []>} : vector<8x32xf32>, vector<32x128xf32>, vector<8x128xf32> -> vector<8x128xf32>
    %c0_3 = arith.constant 0 : index
    %c0_4 = arith.constant 0 : index
    %3 = vector.load %arg3[%c0_3, %c0_4] : memref<1x128xf32, #tpu.memory_space<vmem>>, vector<1x128xf32>
    %4 = vector.broadcast %3 : vector<1x128xf32> to vector<8x128xf32>
    %5 = arith.addf %2, %4 : vector<8x128xf32>
    %cst_5 = arith.constant 0.000000e+00 : f32
    %6 = vector.broadcast %cst_5 : f32 to vector<8x128xf32>
    %7 = arith.maximumf %5, %6 : vector<8x128xf32>
    %c0_6 = arith.constant 0 : index
    %c0_7 = arith.constant 0 : index
    %c0_8 = arith.constant 0 : index
    %8 = vector.load %arg4[%c0_6, %c0_7, %c0_8] : memref<2x128x128xf32, #tpu.memory_space<vmem>>, vector<1x128x128xf32>
    %9 = vector.shape_cast %8 : vector<1x128x128xf32> to vector<128x128xf32>
    %cst_9 = arith.constant dense<0.000000e+00> : vector<8x128xf32>
    %10 = tpu.matmul %7, %9, %cst_9 {dimension_numbers = #tpu.dot_dimension_numbers<[1], [0], [0], [1], [0, 0, 1, 1], [], []>} : vector<8x128xf32>, vector<128x128xf32>, vector<8x128xf32> -> vector<8x128xf32>
    %c0_10 = arith.constant 0 : index
    %c0_11 = arith.constant 0 : index
    %c0_12 = arith.constant 0 : index
    %11 = vector.load %arg5[%c0_10, %c0_11, %c0_12] : memref<2x1x128xf32, #tpu.memory_space<vmem>>, vector<1x1x128xf32>
    %12 = vector.shape_cast %11 : vector<1x1x128xf32> to vector<1x128xf32>
    %13 = vector.broadcast %12 : vector<1x128xf32> to vector<8x128xf32>
    %14 = arith.addf %10, %13 : vector<8x128xf32>
    %cst_13 = arith.constant 0.000000e+00 : f32
    %15 = vector.broadcast %cst_13 : f32 to vector<8x128xf32>
    %16 = arith.maximumf %14, %15 : vector<8x128xf32>
    %c1 = arith.constant 1 : index
    %c0_14 = arith.constant 0 : index
    %c0_15 = arith.constant 0 : index
    %17 = vector.load %arg4[%c1, %c0_14, %c0_15] : memref<2x128x128xf32, #tpu.memory_space<vmem>>, vector<1x128x128xf32>
    %18 = vector.shape_cast %17 : vector<1x128x128xf32> to vector<128x128xf32>
    %cst_16 = arith.constant dense<0.000000e+00> : vector<8x128xf32>
    %19 = tpu.matmul %16, %18, %cst_16 {dimension_numbers = #tpu.dot_dimension_numbers<[1], [0], [0], [1], [0, 0, 1, 1], [], []>} : vector<8x128xf32>, vector<128x128xf32>, vector<8x128xf32> -> vector<8x128xf32>
    %c1_17 = arith.constant 1 : index
    %c0_18 = arith.constant 0 : index
    %c0_19 = arith.constant 0 : index
    %20 = vector.load %arg5[%c1_17, %c0_18, %c0_19] : memref<2x1x128xf32, #tpu.memory_space<vmem>>, vector<1x1x128xf32>
    %21 = vector.shape_cast %20 : vector<1x1x128xf32> to vector<1x128xf32>
    %22 = vector.broadcast %21 : vector<1x128xf32> to vector<8x128xf32>
    %23 = arith.addf %19, %22 : vector<8x128xf32>
    %cst_20 = arith.constant 0.000000e+00 : f32
    %24 = vector.broadcast %cst_20 : f32 to vector<8x128xf32>
    %25 = arith.maximumf %23, %24 : vector<8x128xf32>
    %c0_21 = arith.constant 0 : index
    %c0_22 = arith.constant 0 : index
    %26 = vector.load %arg6[%c0_21, %c0_22] : memref<128x128xf32, #tpu.memory_space<vmem>>, vector<128x128xf32>
    %cst_23 = arith.constant dense<0.000000e+00> : vector<8x128xf32>
    %27 = tpu.matmul %25, %26, %cst_23 {dimension_numbers = #tpu.dot_dimension_numbers<[1], [0], [0], [1], [0, 0, 1, 1], [], []>} : vector<8x128xf32>, vector<128x128xf32>, vector<8x128xf32> -> vector<8x128xf32>
    %c0_24 = arith.constant 0 : index
    %c0_25 = arith.constant 0 : index
    %28 = vector.load %arg7[%c0_24, %c0_25] : memref<1x128xf32, #tpu.memory_space<vmem>>, vector<1x128xf32>
    %29 = vector.broadcast %28 : vector<1x128xf32> to vector<8x128xf32>
    %30 = arith.addf %27, %29 : vector<8x128xf32>
    %31 = arith.negf %30 : vector<8x128xf32>
    %32 = math.exp %31 : vector<8x128xf32>
    %cst_26 = arith.constant 1.000000e+00 : f32
    %33 = vector.broadcast %cst_26 : f32 to vector<8x128xf32>
    %34 = arith.addf %33, %32 : vector<8x128xf32>
    %35 = arith.divf %33, %34 : vector<8x128xf32>
    %c0_27 = arith.constant 0 : index
    %c0_28 = arith.constant 0 : index
    %36 = vector.load %arg8[%c0_27, %c0_28] : memref<8x128xf32, #tpu.memory_space<vmem>>, vector<8x128xf32>
    tpu.vector_store %arg8[%c0_27, %c0_28], %35 {strides = array<i32>} : memref<8x128xf32, #tpu.memory_space<vmem>>, vector<8x128xf32>,
    return
  }
  func.func @transform_0(%arg0: i32) -> (i32, i32) {
    %c0_i32 = arith.constant 0 : i32
    %c0_i32_0 = arith.constant 0 : i32
    return %arg0, %c0_i32 : i32, i32
  }
  func.func @transform_1(%arg0: i32) -> (i32, i32) {
    %c0_i32 = arith.constant 0 : i32
    %c0_i32_0 = arith.constant 0 : i32
    %c0_i32_1 = arith.constant 0 : i32
    return %c0_i32, %c0_i32_0 : i32, i32
  }
  func.func @transform_2(%arg0: i32) -> (i32, i32) {
    %c0_i32 = arith.constant 0 : i32
    %c0_i32_0 = arith.constant 0 : i32
    %c0_i32_1 = arith.constant 0 : i32
    return %c0_i32, %c0_i32_0 : i32, i32
  }
  func.func @transform_3(%arg0: i32) -> (i32, i32, i32) {
    %c0_i32 = arith.constant 0 : i32
    %c0_i32_0 = arith.constant 0 : i32
    %c0_i32_1 = arith.constant 0 : i32
    %c0_i32_2 = arith.constant 0 : i32
    return %c0_i32, %c0_i32_0, %c0_i32_1 : i32, i32, i32
  }
  func.func @transform_4(%arg0: i32) -> (i32, i32, i32) {
    %c0_i32 = arith.constant 0 : i32
    %c0_i32_0 = arith.constant 0 : i32
    %c0_i32_1 = arith.constant 0 : i32
    %c0_i32_2 = arith.constant 0 : i32
    return %c0_i32, %c0_i32_0, %c0_i32_1 : i32, i32, i32
  }
  func.func @transform_5(%arg0: i32) -> (i32, i32) {
    %c0_i32 = arith.constant 0 : i32
    %c0_i32_0 = arith.constant 0 : i32
    %c0_i32_1 = arith.constant 0 : i32
    return %c0_i32, %c0_i32_0 : i32, i32
  }
  func.func @transform_6(%arg0: i32) -> (i32, i32) {
    %c0_i32 = arith.constant 0 : i32
    %c0_i32_0 = arith.constant 0 : i32
    %c0_i32_1 = arith.constant 0 : i32
    return %c0_i32, %c0_i32_0 : i32, i32
  }
  func.func @transform_7(%arg0: i32) -> (i32, i32) {
    %c0_i32 = arith.constant 0 : i32
    %c0_i32_0 = arith.constant 0 : i32
    return %arg0, %c0_i32 : i32, i32
  }
}

</mosaic_0001>

<bundles_post_ra>
// kernel: tpu_custom_call.1
= control target key start
LH: loop header
LB: loop body
LE: loop exit
PB: predicated region body
PF: predicated region fallthrough
CT: control target
= control target key end

     0   :  { %12 = vsyncpa [#allocation3], 0  ;;  %s505_s0 = inlined_call_operand.hbm [shape: f32[8,32], index: 0, kind: input, shape index: {}]   ;;  %s506_s1 = inlined_call_operand.hbm [shape: f32[32,128], index: 1, kind: input, shape index: {}]   ;;  %s507_s2 = inlined_call_operand.vmem [shape: f32[1,128], index: 2, kind: input, shape index: {}]   ;;  %s508_s3 = inlined_call_operand.hbm [shape: f32[2,128,128], index: 3, kind: input, shape index: {}]   ;;  %s509_s4 = inlined_call_operand.vmem [shape: f32[2,1,128], index: 4, kind: input, shape index: {}]   ;;  %s510_s5 = inlined_call_operand.hbm [shape: f32[128,128], index: 5, kind: input, shape index: {}]   ;;  %s511_s6 = inlined_call_operand.vmem [shape: f32[1,128], index: 6, kind: input, shape index: {}]   ;;  %s512_s7 = inlined_call_operand.hbm [shape: f32[8,128], index: 7, kind: output, shape index: {}]  }
   0x1   :  { %13 = vsyncpa [#allocation6], 0 }
   0x2   :  { %14 = vsyncpa [#allocation9], 0  ;;  %s31_s26 = sshll.u32 %s506_s1, 4  ;;  %s32_s26 = int_to_ptr.hbm [resolvable:$true] %s31_s26 }
   0x3   :  { %15 = vsyncpa [#allocation4], 0  ;;  %s431_s27 = smov [#allocation5]   ;;  %s21_s8 = sshll.u32 %s505_s0, 4  ;;  %s22_s8 = int_to_ptr.hbm [resolvable:$true] %s21_s8 }
   0x4   :  { %s33_s28 = sshll.u32 %s431_s27, 4  ;;  %s432_s9 = smov 128   ;;  %s34_s28 = int_to_ptr.vmem [resolvable:$true] %s33_s28 }
   0x5   :  { %s433_s10 = smov 8   ;;  %s434_s11 = smov [#allocation2]  }
   0x6   :  { %39 = dma.hbm_to_vmem [thread:$0]  %s32_s26, 512, %s34_s28, [#allocation6], %s432_s9, %s432_s9, %s433_s10  }
   0x7   :  { %s23_s12 = sshll.u32 %s434_s11, 4  ;;  %s46_s15 = sshll.u32 %s508_s3, 4  ;;  %s24_s12 = int_to_ptr.vmem [resolvable:$true] %s23_s12  ;;  %s47_s15 = int_to_ptr.hbm [resolvable:$true] %s46_s15 }
   0x8   :  { %26 = dma.hbm_to_vmem [thread:$0]  %s22_s8, 128, %s24_s12, [#allocation3]  }
   0x9   :  { %s61_s17 = sshll.u32 %s510_s5, 4  ;;  %s435_s18 = smov [#allocation7]   ;;  %s62_s17 = int_to_ptr.hbm [resolvable:$true] %s61_s17 }
   0xa   :  { %s48_s19 = sshll.u32 %s435_s18, 4  ;;  %s436_s0 = smov [#allocation8]   ;;  %s49_s19 = int_to_ptr.vmem [resolvable:$true] %s48_s19 }
   0xb   :  { %54 = dma.hbm_to_vmem [thread:$0]  %s47_s15, 4096, %s49_s19, [#allocation6], %s432_s9, %s432_s9, %s433_s10  }
   0xc   :  { %s63_s20 = sshll.u32 %s436_s0, 4  ;;  %s64_s20 = int_to_ptr.vmem [resolvable:$true] %s63_s20 }
   0xd   :  { %69 = dma.hbm_to_vmem [thread:$0]  %s62_s17, 2048, %s64_s20, [#allocation9], %s432_s9, %s432_s9, %s433_s10  }
   0xe   :  { %423 = dma.done.wait [#allocation3], 128  }
   0xf   :  { %424 = vsyncadd [#allocation3], 4294967168 }
  0x10   :  { %425 = dma.done.wait [#allocation6], 4608  }
  0x11   :  { %426 = vsyncadd [#allocation6], 4294962688 }
  0x12   :  { %427 = dma.done.wait [#allocation9], 2048  }
  0x13   :  { %428 = vsyncadd [#allocation9], 4294965248  ;;  %v92_v0 = vld [vmem:[#allocation5 + $0x18] sm:$0xff]  ;;  %v91_v1 = vld [vmem:[#allocation5 + $0x10] sm:$0xff]  ;;  %vm97_vm0 = vcmask 261120  }
  0x14   :  { %113 = vmatpush.msra.mxu0 %v92_v0  ;;  %v137_v2 = vld [vmem:[#allocation7 + $0x78] sm:$0xff]  ;;  %v90_v3 = vld [vmem:[#allocation5 + $0x8] sm:$0xff]  ;;  %v136_v4 = vld [vmem:[#allocation7 + $0x70] sm:$0xff] }
  0x15   :  { %142 = vmatpush.msra.mxu1 %v137_v2  ;;  %v135_v5 = vld [vmem:[#allocation7 + $0x68] sm:$0xff]  ;;  %v89_v6 = vld [vmem:[#allocation5] sm:$0xff]  ;;  %v88_v7 = vld [vmem:[#allocation2] sm:$0xff] }
  0x16   :  { %114 = vmatpush.msra.mxu0 %v91_v1  ;;  %v134_v8 = vld [vmem:[#allocation7 + $0x60] sm:$0xff]  ;;  %v133_v9 = vld [vmem:[#allocation7 + $0x58] sm:$0xff]  ;;  %v132_v10 = vld [vmem:[#allocation7 + $0x50] sm:$0xff] }
  0x17   :  { %143 = vmatpush.msra.mxu1 %v136_v4  ;;  %v131_v11 = vld [vmem:[#allocation7 + $0x48] sm:$0xff]  ;;  %v130_v12 = vld [vmem:[#allocation7 + $0x40] sm:$0xff]  ;;  %v129_v13 = vld [vmem:[#allocation7 + $0x38] sm:$0xff] }
  0x18   :  { %115 = vmatpush.msra.mxu0 %v90_v3  ;;  %v128_v14 = vld [vmem:[#allocation7 + $0x30] sm:$0xff]  ;;  %v127_v15 = vld [vmem:[#allocation7 + $0x28] sm:$0xff]  ;;  %v126_v16 = vld [vmem:[#allocation7 + $0x20] sm:$0xff] }
  0x19   :  { %144 = vmatpush.msra.mxu1 %v135_v5  ;;  %v125_v17 = vld [vmem:[#allocation7 + $0x18] sm:$0xff]  ;;  %v124_v18 = vld [vmem:[#allocation7 + $0x10] sm:$0xff]  ;;  %v123_v19 = vld [vmem:[#allocation7 + $0x8] sm:$0xff] }
  0x1a   :  { %116 = vmatpush.msra.mxu0 %v89_v6  ;;  %v122_v20 = vld [vmem:[#allocation7] sm:$0xff]  ;;  %v179_v21 = vld [vmem:[#allocation7 + $0xf8] sm:$0xff]  ;;  %v178_v22 = vld [vmem:[#allocation7 + $0xf0] sm:$0xff] }
  0x1b   :  { %285 = vmatmul.msk.f32.vlgmr.msra.gmra.mxu0 %vm97_vm0, %v88_v7  ;;  %145 = vmatpush.msra.mxu1 %v134_v8  ;;  %v177_v23 = vld [vmem:[#allocation7 + $0xe8] sm:$0xff]  ;;  %v176_v24 = vld [vmem:[#allocation7 + $0xe0] sm:$0xff]  ;;  %v175_v25 = vld [vmem:[#allocation7 + $0xd8] sm:$0xff] }
  0x1c   :  { %185 = vmatpush.msra.mxu2 %v179_v21  ;;  %v174_v26 = vld [vmem:[#allocation7 + $0xd0] sm:$0xff]  ;;  %v173_v27 = vld [vmem:[#allocation7 + $0xc8] sm:$0xff]  ;;  %v172_v28 = vld [vmem:[#allocation7 + $0xc0] sm:$0xff] }
  0x1d   :  { %146 = vmatpush.msra.mxu1 %v133_v9  ;;  %v171_v29 = vld [vmem:[#allocation7 + $0xb8] sm:$0xff]  ;;  %v170_v30 = vld [vmem:[#allocation7 + $0xb0] sm:$0xff]  ;;  %v169_v31 = vld [vmem:[#allocation7 + $0xa8] sm:$0xff] }
  0x1e   :  { %186 = vmatpush.msra.mxu2 %v178_v22  ;;  %v168_v32 = vld [vmem:[#allocation7 + $0xa0] sm:$0xff]  ;;  %v167_v33 = vld [vmem:[#allocation7 + $0x98] sm:$0xff]  ;;  %v166_v38 = vld [vmem:[#allocation7 + $0x90] sm:$0xff] }
  0x1f   :  { %147 = vmatpush.msra.mxu1 %v132_v10  ;;  %v295_v34 = vld [vmem:[%s507_s2] ss:$0 sm:$0xff]  ;;  %v165_v39 = vld [vmem:[#allocation7 + $0x88] sm:$0xff]  ;;  %v164_v40 = vld [vmem:[#allocation7 + $0x80] sm:$0xff] }
  0x20   :  { %187 = vmatpush.msra.mxu2 %v177_v23  ;;  %v221_v41 = vld [vmem:[#allocation8 + $0x78] sm:$0xff]  ;;  %v220_v42 = vld [vmem:[#allocation8 + $0x70] sm:$0xff]  ;;  %v219_v43 = vld [vmem:[#allocation8 + $0x68] sm:$0xff] }
  0x21   :  { %148 = vmatpush.msra.mxu1 %v131_v11  ;;  %226 = vmatpush.msra.mxu3 %v221_v41  ;;  %v218_v44 = vld [vmem:[#allocation8 + $0x60] sm:$0xff]  ;;  %v217_v45 = vld [vmem:[#allocation8 + $0x58] sm:$0xff]  ;;  %v216_v46 = vld [vmem:[#allocation8 + $0x50] sm:$0xff] }
  0x22   :  { %188 = vmatpush.msra.mxu2 %v176_v24  ;;  %v215_v47 = vld [vmem:[#allocation8 + $0x48] sm:$0xff]  ;;  %v214_v48 = vld [vmem:[#allocation8 + $0x40] sm:$0xff]  ;;  %v213_v49 = vld [vmem:[#allocation8 + $0x38] sm:$0xff] }
  0x23   :  { %149 = vmatpush.msra.mxu1 %v130_v12  ;;  %227 = vmatpush.msra.mxu3 %v220_v42  ;;  %v212_v50 = vld [vmem:[#allocation8 + $0x30] sm:$0xff]  ;;  %v211_v51 = vld [vmem:[#allocation8 + $0x28] sm:$0xff]  ;;  %v210_v52 = vld [vmem:[#allocation8 + $0x20] sm:$0xff] }
  0x24   :  { %189 = vmatpush.msra.mxu2 %v175_v25  ;;  %v209_v53 = vld [vmem:[#allocation8 + $0x18] sm:$0xff]  ;;  %v208_v58 = vld [vmem:[#allocation8 + $0x10] sm:$0xff]  ;;  %v207_v59 = vld [vmem:[#allocation8 + $0x8] sm:$0xff] }
  0x25   :  { %150 = vmatpush.msra.mxu1 %v129_v13  ;;  %228 = vmatpush.msra.mxu3 %v219_v43  ;;  %v296_v54 = vld [vmem:[%s509_s4] ss:$0 sm:$0xff]  ;;  %v206_v60 = vld [vmem:[#allocation8] sm:$0xff]  ;;  %v297_v61 = vld [vmem:[%s509_s4 + $0x1] ss:$0 sm:$0xff]  ;;  %s437_s4 = smov [#allocation10]  }
  0x26   :  { %190 = vmatpush.msra.mxu2 %v174_v26  ;;  %v298_v1 = vld [vmem:[%s511_s6] ss:$0 sm:$0xff]  ;;  %s271_s26 = sshll.u32 %s437_s4, 4  ;;  %s273_s6 = sshll.u32 %s512_s7, 4  ;;  %s272_s26 = int_to_ptr.vmem [resolvable:$true] %s271_s26  ;;  %s274_s6 = int_to_ptr.hbm [resolvable:$true] %s273_s6 }
  0x27   :  { %151 = vmatpush.msra.mxu1 %v128_v14  ;;  %229 = vmatpush.msra.mxu3 %v218_v44 }
  0x28   :  { %191 = vmatpush.msra.mxu2 %v173_v27 }
  0x29   :  { %152 = vmatpush.msra.mxu1 %v127_v15  ;;  %230 = vmatpush.msra.mxu3 %v217_v45 }
  0x2a   :  { %192 = vmatpush.msra.mxu2 %v172_v28 }
  0x2b   :  { %153 = vmatpush.msra.mxu1 %v126_v16  ;;  %231 = vmatpush.msra.mxu3 %v216_v46 }
  0x2c   :  { %193 = vmatpush.msra.mxu2 %v171_v29 }
  0x2d   :  { %154 = vmatpush.msra.mxu1 %v125_v17  ;;  %232 = vmatpush.msra.mxu3 %v215_v47 }
  0x2e   :  { %194 = vmatpush.msra.mxu2 %v170_v30 }
  0x2f   :  { %155 = vmatpush.msra.mxu1 %v124_v18  ;;  %233 = vmatpush.msra.mxu3 %v214_v48 }
  0x30   :  { %195 = vmatpush.msra.mxu2 %v169_v31 }
  0x31   :  { %156 = vmatpush.msra.mxu1 %v123_v19  ;;  %234 = vmatpush.msra.mxu3 %v213_v49 }
  0x32   :  { %196 = vmatpush.msra.mxu2 %v168_v32 }
  0x33   :  { %157 = vmatpush.msra.mxu1 %v122_v20  ;;  %235 = vmatpush.msra.mxu3 %v212_v50 }
  0x34   :  { %197 = vmatpush.msra.mxu2 %v167_v33 }
  0x35   :  { %236 = vmatpush.msra.mxu3 %v211_v51 }
  0x36   :  { %198 = vmatpush.msra.mxu2 %v166_v38 }
  0x37   :  { %237 = vmatpush.msra.mxu3 %v210_v52 }
  0x38   :  { %199 = vmatpush.msra.mxu2 %v165_v39 }
  0x39   :  { %238 = vmatpush.msra.mxu3 %v209_v53 }
  0x3a   :  { %200 = vmatpush.msra.mxu2 %v164_v40 }
  0x3b   :  { %239 = vmatpush.msra.mxu3 %v208_v58 }
  0x3d   :  { %240 = vmatpush.msra.mxu3 %v207_v59 }
  0x3f   :  { %241 = vmatpush.msra.mxu3 %v206_v60 }
  0x98   :  { %v118_v35 = vpop.f32.mrf.mxu0 }
  0x99   :  { %v119_v36 = vadd.f32 %v295_v34, %v118_v35 }
  0x9b   :  { %v121_v37 = vmax.f32 %v119_v36, 0.0 }
  0x9d   :  { %158 = vmatmul.f32.vlgmr.msra.gmra.mxu1 %v121_v37 }
 0x11a   :  { %v159_v55 = vpop.f32.mrf.mxu1 }
 0x11b   :  { %v160_v56 = vadd.f32 %v296_v54, %v159_v55 }
 0x11d   :  { %v162_v57 = vmax.f32 %v160_v56, 0.0 }
 0x11f   :  { %201 = vmatmul.f32.vlgmr.msra.gmra.mxu2 %v162_v57 }
 0x1a2   :  { %v202_v62 = vpop.f32.mrf.mxu2 }
 0x1a3   :  { %v203_v63 = vadd.f32 %v297_v61, %v202_v62 }
 0x1a5   :  { %v205_v0 = vmax.f32 %v203_v63, 0.0 }
 0x1a7   :  { %242 = vmatmul.f32.vlgmr.msra.gmra.mxu3 %v205_v0 }
 0x22a   :  { %v243_v2 = vpop.f32.mrf.mxu3 }
 0x22b   :  { %v244_v3 = vadd.f32 %v298_v1, %v243_v2 }
 0x22d   :  { %v287_v4 = vmul.f32 -1.442695, %v244_v3 }
 0x22f   :  { %299 = vpow2.f32 %v287_v4 }
 0x235   :  { %v300_v5 = vpop.eup %299 }
 0x236   :  { %v249_v6 = vadd.f32 1.0, %v300_v5 }
 0x238   :  { %301 = vrcp.f32 %v249_v6  ;;  %v261_v10 = vand.u32 2147483648, %v249_v6  ;;  %v259_v12 = vand.u32 2147483647, %v249_v6  ;;  %vm255_vm2 = vweird.f32 %v249_v6 }
 0x23a   :  { %v262_v14 = vor.u32 1.1754944e-38, %v261_v10  ;;  %vm260_vm4 = vcmp.eq.f32.partialorder %v259_v12, 8.507059e+37 }
 0x23e   :  { %v302_v7 = vpop.eup %301 }
 0x23f   :  { %v251_v8 = vmul.f32 %v302_v7, %v249_v6  ;;  %vm256_vm1 = vweird.f32 %v302_v7 }
 0x240   :  { %vm257_vm3 = vmor %vm255_vm2, %vm256_vm1 }
 0x241   :  { %v252_v9 = vsub.f32 1.0, %v251_v8 }
 0x243   :  { %v253_v11 = vmul.f32 %v302_v7, %v252_v9 }
 0x245   :  { %v254_v13 = vadd.f32 %v302_v7, %v253_v11 }
 0x247   :  { %v258_v15 = vsel %vm257_vm3, %v302_v7, %v254_v13 }
 0x248   :  { %v263_v16 = vsel %vm260_vm4, %v262_v14, %v258_v15 }
 0x249   :  { %265 = vst [vmem:[#allocation10] sm:$0xff] %v263_v16 }
 0x24a   :  { %276 = dma.vmem_to_hbm [thread:$0]  %s272_s26, 128, %s274_s6, [#allocation4]  }
 0x24b   :  { %429 = dma.done.wait [#allocation4], 128  }
 0x24c   :  { %430 = vsyncadd [#allocation4], 4294967168 }
 0x24d   :  { %281 = vsyncpa [#allocation3], 1 }
 0x24e   :  { %282 = vsyncpa [#allocation6], 1 }
 0x24f   :  { %283 = vsyncpa [#allocation9], 1 }
 0x250   :  { %284 = vsyncpa [#allocation4], 1 }

</bundles_post_ra>
